<compile_context>
chip_gen: v5e
topology: v5e:2x2
jax: 0.10.0
libtpu: 0.0.40
codegen_flags: <defaults>
</compile_context>

<pallas_src>
import math

import numpy as np
import jax
import jax.numpy as jnp
from jax.experimental import pallas as pl
from jax.experimental.pallas import tpu as pltpu


def _cdiv(a, b):
    return -(-a // b)


def _round_up(a, m):
    return _cdiv(a, m) * m


def _num_core_splits():
    """2 on dual-TensorCore chips (v7x-class), 1 on single-TC chips (v5e/v6e)."""
    try:
        kind = jax.devices()[0].device_kind.lower()
    except Exception:
        return 1
    return 2 if ("v7" in kind or "7x" in kind) else 1


def make_wasserstein_distance(min_T2=10.0, max_T2=2000.0, num_samples=60,
                              batch_tile=8192, use_core_parallel=False):
    """Builds the module constants and returns (forward, arr)."""
    arr = np.logspace(
        math.log10(min_T2), math.log10(max_T2), num=num_samples,
        endpoint=True, base=10.0,
    ).astype(np.float32)

    # Trapezoid rule: 0.5 * sum_i dw[i]*(c[i] + c[i+1]) == 0.5 * (c @ w) with
    # dw[i] = arr[i+1] - arr[i]; w[i] = dw[i-1] + dw[i] (one-sided at ends).
    dw = arr[1:] - arr[:-1]
    w = np.zeros((num_samples,), np.float32)
    w[:-1] += dw
    w[1:] += dw
    w_row = w.reshape(1, num_samples)

    # tri[j, i] = 1 if j <= i  ->  (diff @ tri)[b, i] = cumsum(diff)[b, i]
    tri_np = np.triu(np.ones((num_samples, num_samples), np.float32))

    nc = _num_core_splits()

    def forward(y_actual, y_pred):
        assert y_actual.shape == y_pred.shape
        B, N = y_actual.shape
        assert N == num_samples

        # Batch tile: multiple of 8 sublanes, at most batch_tile rows, at most
        # the (rounded-up) per-core share of the batch.
        tb = min(batch_tile, _round_up(_cdiv(B, nc), 8))
        n_blocks = _cdiv(B, tb)          # blocks that overlap valid rows
        nb = _cdiv(n_blocks, nc)         # batch blocks per core split
        last_blk = n_blocks - 1
        # Rows >= B (partial boundary block / duplicated clamped blocks) must
        # be masked inside the kernel; no wrapper-side padding copy.
        need_mask = (nc * nb * tb != B)

        tri = jnp.asarray(tri_np)
        # Fold 0.5 and 1/B (true batch size, not padded) into the weights.
        w_scaled = jnp.asarray(w_row * (0.5 / B), jnp.float32)

        def kernel(ya_ref, yp_ref, tri_ref, w_ref, out_ref, acc_ref):
            # Grid = (core_split, batch_tiles); axis 1 is the reduction axis.
            j = pl.program_id(1)

            @pl.when(j == 0)
            def _init():
                acc_ref[...] = jnp.zeros_like(acc_ref)

            diff = (ya_ref[...].astype(jnp.float32)
                    - yp_ref[...].astype(jnp.float32))            # (tb, N)

            if need_mask:
                # Zero rows beyond the true batch (unspecified data in the
                # partial boundary block / clamped duplicate blocks).
                blk = pl.program_id(0) * nb + j                   # logical blk
                rows = blk * tb + jax.lax.broadcasted_iota(
                    jnp.int32, (tb, N), 0)
                diff = jnp.where(rows < B, diff, 0.0)

            # cumsum along the bin axis via resident upper-triangular ones.
            cdf = jnp.dot(diff, tri_ref[...],
                          preferred_element_type=jnp.float32)     # (tb, N)

            # Batch-reduce |cdf| down to one (8, N) vreg row before the
            # accumulate: pure VALU adds, no (tb, N) scratch load/store.
            acc_ref[...] += jnp.abs(cdf).reshape(tb // 8, 8, N).sum(axis=0)

            @pl.when(j == pl.num_programs(1) - 1)
            def _finalize():
                # w_ref already carries trapezoid widths * 0.5 / B.
                weighted = acc_ref[...] * w_ref[...]              # (8, N)
                col = jnp.sum(weighted, axis=0, keepdims=True)    # (1, N)
                tot = jnp.sum(col, axis=1, keepdims=True)         # (1, 1)
                out_ref[...] = tot.reshape(1, 1, 1)

        if nc * nb == n_blocks:
            def blk_map(c, j):
                return (c * nb + j, 0)
        else:
            # Clamp fully out-of-range block indices onto the last valid block
            # so the DMA window stays inside the array; those steps contribute
            # zero because the in-kernel row mask covers them.
            def blk_map(c, j):
                return (jnp.minimum(c * nb + j, last_blk), 0)

        if nc > 1 and use_core_parallel:
            # v7x only: force the core split if plain "parallel" leaves a TC idle.
            dims = (pltpu.CORE_PARALLEL, pltpu.ARBITRARY)
        else:
            dims = ("parallel", "arbitrary")

        partials = pl.pallas_call(
            kernel,
            out_shape=jax.ShapeDtypeStruct((nc, 1, 1), jnp.float32),
            grid_spec=pltpu.PrefetchScalarGridSpec(
                num_scalar_prefetch=0,
                grid=(nc, nb),
                in_specs=[
                    pl.BlockSpec((tb, N), blk_map),               # y_actual
                    pl.BlockSpec((tb, N), blk_map),               # y_pred
                    pl.BlockSpec((N, N), lambda c, j: (0, 0)),    # tri (resident)
                    pl.BlockSpec((1, N), lambda c, j: (0, 0)),    # weights (resident)
                ],
                out_specs=pl.BlockSpec((1, 1, 1), lambda c, j: (c, 0, 0)),
                scratch_shapes=[pltpu.VMEM((8, N), jnp.float32)],
            ),
            compiler_params=pltpu.CompilerParams(
                dimension_semantics=dims),
        )(y_actual, y_pred, tri, w_scaled)

        # Combine per-core partial sums (each already scaled by 0.5 / B).
        return jnp.sum(partials)

    return forward, arr


def _reference(y_actual, y_pred, arr):
    # Pure-JAX reference mirroring the PyTorch forward exactly.
    batch_size = y_actual.shape[0]
    arr_t = jnp.tile(jnp.asarray(arr, jnp.float32), (batch_size, 1))
    abs_cdf = jnp.abs(jnp.cumsum(y_actual - y_pred, axis=1))
    return jnp.mean(
        0.5
        * jnp.sum(
            (-arr_t[:, :-1] + arr_t[:, 1:]) * (abs_cdf[:, :-1] + abs_cdf[:, 1:]),
            axis=1,
        )
    )


if __name__ == "__main__":
    batch = 2
    num_samples = 60  # module default

    key = jax.random.PRNGKey(0)
    k1, k2 = jax.random.split(key)
    # Simulated (normalized) T2 distributions for actual / predicted.
    y_actual = jax.nn.softmax(jax.random.normal(k1, (batch, num_samples)), axis=1)
    y_pred = jax.nn.softmax(jax.random.normal(k2, (batch, num_samples)), axis=1)

    wass_fn, arr = make_wasserstein_distance(
        min_T2=10.0, max_T2=2000.0, num_samples=num_samples
    )

    loss = jax.block_until_ready(wass_fn(y_actual, y_pred))

    ref = _reference(y_actual, y_pred, arr)
    assert jnp.allclose(loss, ref, rtol=1e-5, atol=1e-5), (loss, ref)

    print("KERNEL_OK")
</pallas_src>

<mosaic_0001>
module attributes {stable_mosaic.version = 11 : i64} {
  func.func @kernel(%arg0: i32, %arg1: i32, %arg2: memref<8x60xf32, #tpu.memory_space<vmem>>, %arg3: memref<8x60xf32, #tpu.memory_space<vmem>>, %arg4: memref<60x60xf32, #tpu.memory_space<vmem>>, %arg5: memref<1x60xf32, #tpu.memory_space<vmem>>, %arg6: memref<1x1x1xf32, #tpu.memory_space<vmem>>, %arg7: memref<8x60xf32, #tpu.memory_space<vmem>>) attributes {dimension_semantics = [#tpu.dimension_semantics<parallel>, #tpu.dimension_semantics<arbitrary>], iteration_bounds = array<i64: 1, 1>, scalar_prefetch = 0 : i64, scratch_operands = 1 : i64, tpu.core_type = #tpu.core_type<tc>, window_params = [{transform_indices = @transform_0, window_bounds = array<i64: 8, 60>}, {transform_indices = @transform_1, window_bounds = array<i64: 8, 60>}, {pipeline_mode = #tpu.pipeline_mode<synchronous>, transform_indices = @transform_2, window_bounds = array<i64: 60, 60>}, {pipeline_mode = #tpu.pipeline_mode<synchronous>, transform_indices = @transform_3, window_bounds = array<i64: 1, 60>}, {transform_indices = @transform_4, window_bounds = array<i64: 1, 1, 1>}]} {
    %c0_i32 = arith.constant 0 : i32
    %0 = arith.cmpi eq, %arg1, %c0_i32 : i32
    %1 = arith.extui %0 : i1 to i32
    %c0_i32_0 = arith.constant 0 : i32
    %2 = arith.cmpi ne, %1, %c0_i32_0 : i32
    scf.if %2 {
      %cst_14 = arith.constant 0.000000e+00 : f32
      %27 = vector.broadcast %cst_14 : f32 to vector<8x60xf32>
      %c0_15 = arith.constant 0 : index
      %c0_16 = arith.constant 0 : index
      %28 = vector.load %arg7[%c0_15, %c0_16] : memref<8x60xf32, #tpu.memory_space<vmem>>, vector<8x60xf32>
      tpu.vector_store %arg7[%c0_15, %c0_16], %27 {strides = array<i32>} : memref<8x60xf32, #tpu.memory_space<vmem>>, vector<8x60xf32>,
    } else {
    }
    %c0 = arith.constant 0 : index
    %c0_1 = arith.constant 0 : index
    %3 = vector.load %arg2[%c0, %c0_1] : memref<8x60xf32, #tpu.memory_space<vmem>>, vector<8x60xf32>
    %c0_2 = arith.constant 0 : index
    %c0_3 = arith.constant 0 : index
    %4 = vector.load %arg3[%c0_2, %c0_3] : memref<8x60xf32, #tpu.memory_space<vmem>>, vector<8x60xf32>
    %5 = arith.subf %3, %4 : vector<8x60xf32>
    %c1_i32 = arith.constant 1 : i32
    %6 = arith.muli %arg0, %c1_i32 : i32
    %7 = arith.addi %6, %arg1 : i32
    %c8_i32 = arith.constant 8 : i32
    %8 = arith.muli %7, %c8_i32 : i32
    %9 = tpu.iota {dimensions = array<i32: 0>} : vector<8x60xi32>
    %10 = vector.broadcast %8 : i32 to vector<8x60xi32>
    %11 = arith.addi %10, %9 : vector<8x60xi32>
    %c2_i32 = arith.constant 2 : i32
    %12 = vector.broadcast %c2_i32 : i32 to vector<8x60xi32>
    %13 = arith.cmpi slt, %11, %12 : vector<8x60xi32>
    %cst = arith.constant 0.000000e+00 : f32
    %14 = vector.broadcast %cst : f32 to vector<8x60xf32>
    %15 = arith.select %13, %5, %14 : vector<8x60xi1>, vector<8x60xf32>
    %c0_4 = arith.constant 0 : index
    %c0_5 = arith.constant 0 : index
    %16 = vector.load %arg4[%c0_4, %c0_5] : memref<60x60xf32, #tpu.memory_space<vmem>>, vector<60x60xf32>
    %cst_6 = arith.constant dense<0.000000e+00> : vector<8x60xf32>
    %17 = tpu.matmul %15, %16, %cst_6 {dimension_numbers = #tpu.dot_dimension_numbers<[1], [0], [0], [1], [0, 0, 1, 1], [], []>} : vector<8x60xf32>, vector<60x60xf32>, vector<8x60xf32> -> vector<8x60xf32>
    %c0_7 = arith.constant 0 : index
    %c0_8 = arith.constant 0 : index
    %18 = vector.load %arg7[%c0_7, %c0_8] : memref<8x60xf32, #tpu.memory_space<vmem>>, vector<8x60xf32>
    %19 = math.absf %17 : vector<8x60xf32>
    %20 = vector.shape_cast %19 : vector<8x60xf32> to vector<1x8x60xf32>
    %cst_9 = arith.constant dense<0.000000e+00> : vector<8x60xf32>
    %21 = vector.multi_reduction <add>, %20, %cst_9 [0] : vector<1x8x60xf32> to vector<8x60xf32>
    %22 = arith.addf %18, %21 : vector<8x60xf32>
    %c0_10 = arith.constant 0 : index
    %c0_11 = arith.constant 0 : index
    %23 = vector.load %arg7[%c0_10, %c0_11] : memref<8x60xf32, #tpu.memory_space<vmem>>, vector<8x60xf32>
    tpu.vector_store %arg7[%c0_10, %c0_11], %22 {strides = array<i32>} : memref<8x60xf32, #tpu.memory_space<vmem>>, vector<8x60xf32>,
    %c0_i32_12 = arith.constant 0 : i32
    %24 = arith.cmpi eq, %arg1, %c0_i32_12 : i32
    %25 = arith.extui %24 : i1 to i32
    %c0_i32_13 = arith.constant 0 : i32
    %26 = arith.cmpi ne, %25, %c0_i32_13 : i32
    scf.if %26 {
      %c0_14 = arith.constant 0 : index
      %c0_15 = arith.constant 0 : index
      %27 = vector.load %arg7[%c0_14, %c0_15] : memref<8x60xf32, #tpu.memory_space<vmem>>, vector<8x60xf32>
      %c0_16 = arith.constant 0 : index
      %c0_17 = arith.constant 0 : index
      %28 = vector.load %arg5[%c0_16, %c0_17] : memref<1x60xf32, #tpu.memory_space<vmem>>, vector<1x60xf32>
      %29 = vector.broadcast %28 : vector<1x60xf32> to vector<8x60xf32>
      %30 = arith.mulf %27, %29 : vector<8x60xf32>
      %cst_18 = arith.constant dense<0.000000e+00> : vector<60xf32>
      %31 = vector.multi_reduction <add>, %30, %cst_18 [0] : vector<8x60xf32> to vector<60xf32>
      %32 = vector.shape_cast %31 : vector<60xf32> to vector<1x60xf32>
      %cst_19 = arith.constant dense<0.000000e+00> : vector<1xf32>
      %33 = vector.multi_reduction <add>, %32, %cst_19 [1] : vector<1x60xf32> to vector<1xf32>
      %34 = vector.shape_cast %33 : vector<1xf32> to vector<1x1xf32>
      %35 = vector.shape_cast %34 : vector<1x1xf32> to vector<1x1x1xf32>
      %c0_20 = arith.constant 0 : index
      %c0_21 = arith.constant 0 : index
      %c0_22 = arith.constant 0 : index
      %36 = vector.load %arg6[%c0_20, %c0_21, %c0_22] : memref<1x1x1xf32, #tpu.memory_space<vmem>>, vector<1x1x1xf32>
      tpu.vector_store %arg6[%c0_20, %c0_21, %c0_22], %35 {strides = array<i32>} : memref<1x1x1xf32, #tpu.memory_space<vmem>>, vector<1x1x1xf32>,
    } else {
    }
    return
  }
  func.func @transform_0(%arg0: i32, %arg1: i32) -> (i32, i32) {
    %c1_i32 = arith.constant 1 : i32
    %0 = arith.muli %arg0, %c1_i32 : i32
    %1 = arith.addi %0, %arg1 : i32
    %c0_i32 = arith.constant 0 : i32
    %c0_i32_0 = arith.constant 0 : i32
    return %1, %c0_i32 : i32, i32
  }
  func.func @transform_1(%arg0: i32, %arg1: i32) -> (i32, i32) {
    %c1_i32 = arith.constant 1 : i32
    %0 = arith.muli %arg0, %c1_i32 : i32
    %1 = arith.addi %0, %arg1 : i32
    %c0_i32 = arith.constant 0 : i32
    %c0_i32_0 = arith.constant 0 : i32
    return %1, %c0_i32 : i32, i32
  }
  func.func @transform_2(%arg0: i32, %arg1: i32) -> (i32, i32) {
    %c0_i32 = arith.constant 0 : i32
    %c0_i32_0 = arith.constant 0 : i32
    %c0_i32_1 = arith.constant 0 : i32
    return %c0_i32, %c0_i32_0 : i32, i32
  }
  func.func @transform_3(%arg0: i32, %arg1: i32) -> (i32, i32) {
    %c0_i32 = arith.constant 0 : i32
    %c0_i32_0 = arith.constant 0 : i32
    %c0_i32_1 = arith.constant 0 : i32
    return %c0_i32, %c0_i32_0 : i32, i32
  }
  func.func @transform_4(%arg0: i32, %arg1: i32) -> (i32, i32, i32) {
    %c0_i32 = arith.constant 0 : i32
    %c0_i32_0 = arith.constant 0 : i32
    %c0_i32_1 = arith.constant 0 : i32
    return %arg0, %c0_i32, %c0_i32_0 : i32, i32, i32
  }
}

</mosaic_0001>

<bundles_post_ra>
// kernel: tpu_custom_call.1
= control target key start
LH: loop header
LB: loop body
LE: loop exit
PB: predicated region body
PF: predicated region fallthrough
CT: control target
= control target key end

     0   :  { %9 = vsyncpa [#allocation4], 0  ;;  %s356_s0 = inlined_call_operand.hbm [shape: f32[2,60], index: 0, kind: input, shape index: {}]   ;;  %s357_s1 = inlined_call_operand.hbm [shape: f32[2,60], index: 1, kind: input, shape index: {}]   ;;  %s358_s2 = inlined_call_operand.hbm [shape: f32[60,60], index: 2, kind: input, shape index: {}]   ;;  %s359_s3 = inlined_call_operand.vmem [shape: f32[1,60], index: 3, kind: input, shape index: {}]   ;;  %s360_s4 = inlined_call_operand.hbm [shape: f32[1,1,1], index: 4, kind: output, shape index: {}]  }
   0x1   :  { %10 = vsyncpa [#allocation7], 0 }
   0x2   :  { %11 = vsyncpa [#allocation5], 0 }
   0x3   :  { %20 = vsyncadd [#allocation4], 96  ;;  %s25_s17 = sshll.u32 %s356_s0, 4  ;;  %s302_s18 = smov [#allocation3]   ;;  %s26_s17 = int_to_ptr.hbm [resolvable:$true] %s25_s17 }
   0x4   :  { %s27_s19 = sshll.u32 %s302_s18, 4  ;;  %s303_s20 = smov 32   ;;  %s28_s19 = int_to_ptr.vmem [resolvable:$true] %s27_s19 }
   0x5   :  { %s304_s21 = smov 2  }
   0x6   :  { %33 = dma.hbm_to_vmem [thread:$0]  %s26_s17, 32, %s28_s19, [#allocation4], %s303_s20, %s303_s20, %s304_s21  }
   0x7   :  { %42 = vsyncadd [#allocation7], 96  ;;  %s47_s24 = sshll.u32 %s357_s1, 4  ;;  %s305_s25 = smov [#allocation6]   ;;  %s48_s24 = int_to_ptr.hbm [resolvable:$true] %s47_s24 }
   0x8   :  { %s49_s26 = sshll.u32 %s305_s25, 4  ;;  %s60_s0 = sshll.u32 %s358_s2, 4  ;;  %s50_s26 = int_to_ptr.vmem [resolvable:$true] %s49_s26  ;;  %s61_s0 = int_to_ptr.hbm [resolvable:$true] %s60_s0 }
   0x9   :  { %55 = dma.hbm_to_vmem [thread:$0]  %s48_s24, 32, %s50_s26, [#allocation7], %s303_s20, %s303_s20, %s304_s21  }
   0xa   :  { %s306_s29 = smov [#allocation8]   ;;  %s307_s5 = smov 128  }
   0xb   :  { %s62_s30 = sshll.u32 %s306_s29, 4  ;;  %s308_s6 = smov 8   ;;  %s63_s30 = int_to_ptr.vmem [resolvable:$true] %s62_s30 }
   0xc   :  { %68 = dma.hbm_to_vmem [thread:$0]  %s61_s0, 1024, %s63_s30, [#allocation7], %s307_s5, %s307_s5, %s308_s6  }
   0xd   :  { %296 = dma.done.wait [#allocation4], 128  }
   0xe   :  { %297 = vsyncadd [#allocation4], 4294967168 }
   0xf   :  { %298 = dma.done.wait [#allocation7], 1152  }
  0x10   :  { %299 = vsyncadd [#allocation7], 4294966144  ;;  %vm95_vm0 = vcmask 490496   ;;  %v309_v0 = vmov 0.0   ;;  %vm120_vm1 = vcmask 1043456   ;;  %v114_v2 = vld [vmem:[#allocation8 + $0x30] sm:$0xff]  ;;  %v102_v4 = vlaneseq }
  0x11   :  { %96 = vst.msk [vmem:[#allocation2] sm:$0xff] %vm95_vm0, %v309_v0  ;;  %v115_v1 = vld [vmem:[#allocation8 + $0x38] sm:$0xf]  ;;  %v113_v3 = vld [vmem:[#allocation8 + $0x28] sm:$0xff]  ;;  %v112_v5 = vld [vmem:[#allocation8 + $0x20] sm:$0xff]  ;;  %s310_s7 = smov [#allocation9]  }
  0x12   :  { %188 = vmatpush.msk.msra.mxu0 %vm120_vm1, %v115_v1  ;;  %v111_v6 = vld [vmem:[#allocation8 + $0x18] sm:$0xff]  ;;  %v97_v7 = vld [vmem:[#allocation3] sm:$0xff]  ;;  %v103_v9 = vshrl.u32 %v102_v4, 7  ;;  %v109_v12 = vld [vmem:[#allocation8 + $0x8] sm:$0xff]  ;;  %s175_s8 = sshll.u32 %s310_s7, 4  ;;  %s177_s11 = sshll.u32 %s360_s4, 4  ;;  %s176_s8 = int_to_ptr.vmem [resolvable:$true] %s175_s8  ;;  %s178_s11 = int_to_ptr.hbm [resolvable:$true] %s177_s11 }
  0x13   :  { %v98_v8 = vld [vmem:[#allocation6] sm:$0xff]  ;;  %v110_v10 = vld [vmem:[#allocation8 + $0x10] sm:$0xff]  ;;  %v108_v13 = vld [vmem:[#allocation8] sm:$0xff]  ;;  %vm168_vm3 = vcmask 0  }
  0x14   :  { %133 = vmatpush.msra.mxu0 %v114_v2  ;;  %v99_v11 = vsub.f32 %v97_v7, %v98_v8  ;;  %vm106_vm2 = vcmp.lt.s32.totalorder %v103_v9, 2  ;;  %v199_v19 = vld [vmem:[%s359_s3] ss:$0 sm:$0xff] }
  0x16   :  { %134 = vmatpush.msra.mxu0 %v113_v3  ;;  %v107_v14 = vsel %vm106_vm2, %v99_v11, 0.0 }
  0x18   :  { %135 = vmatpush.msra.mxu0 %v112_v5  ;;  %v144_v16 = vld [vmem:[#allocation2] sm:$0xff] }
  0x1a   :  { %136 = vmatpush.msra.mxu0 %v111_v6 }
  0x1c   :  { %137 = vmatpush.msra.mxu0 %v110_v10 }
  0x1e   :  { %138 = vmatpush.msra.mxu0 %v109_v12 }
  0x20   :  { %139 = vmatpush.msra.mxu0 %v108_v13 }
  0x21   :  { %189 = vmatmul.msk.f32.vlgmr.msra.gmra.mxu0 %vm95_vm0, %v107_v14 }
  0x9e   :  { %v141_v15 = vpop.f32.mrf.mxu0 }
  0x9f   :  { %v145_v17 = vand.u32 2147483647, %v141_v15 }
  0xa1   :  { %v147_v18 = vadd.f32 %v145_v17, %v144_v16 }
  0xa3   :  { %148 = vst.msk [vmem:[#allocation2] sm:$0xff] %vm95_vm0, %v147_v18 }
  0xaa   :  { %v152_v20 = vld [vmem:[#allocation2] sm:$0xff] }
  0xab   :  { %v157_v21 = vmul.f32 %v199_v19, %v152_v20 }
  0xad   :  { %v158_v22 = vsel %vm95_vm0, %v157_v21, 0.0 }
  0xae   :  { %v159_v23 = vrot.slane %v158_v22, 4 }
  0xb0   :  { %v160_v24 = vadd.f32 %v159_v23, %v158_v22 }
  0xb2   :  { %v161_v25 = vrot.slane %v160_v24, 2 }
  0xb4   :  { %v162_v26 = vadd.f32 %v161_v25, %v160_v24 }
  0xb6   :  { %v163_v27 = vrot.slane %v162_v26, 1 }
  0xb8   :  { %v164_v28 = vadd.f32 %v163_v27, %v162_v26 }
  0xba   :  { %v165_v29 = vsel %vm95_vm0, %v164_v28, 0.0 }
  0xbb   :  { %166 = vadd.xlane.f32.xlu0 %v165_v29 }
 0x12e   :  { %v167_v30 = vpop.xlane.xlu0 %166 }
 0x12f   :  { %169 = vst.msk [vmem:[#allocation9] sm:$0x1] %vm168_vm3, %v167_v30 }
 0x130   :  { %180 = dma.vmem_to_hbm [thread:$0]  %s176_s8, 16, %s178_s11, [#allocation5]  }
 0x131   :  { %300 = dma.done.wait [#allocation5], 16  }
 0x132   :  { %301 = vsyncadd [#allocation5], 4294967280 }
 0x133   :  { %185 = vsyncpa [#allocation4], 1 }
 0x134   :  { %186 = vsyncpa [#allocation7], 1 }
 0x135   :  { %187 = vsyncpa [#allocation5], 1 }

</bundles_post_ra>
